<compile_context>
chip_gen: v7x
topology: tpu7x:2x2x1
jax: 0.10.0
libtpu: 0.0.40
codegen_flags: <defaults>
</compile_context>

<pallas_src>
import jax
import jax.numpy as jnp
from jax import lax
from jax.experimental import pallas as pl
from jax.experimental.pallas import tpu as pltpu


def _vanilla_rnn_kernel(x_ref, u_ref, w_ref, v_ref, bh_ref, bp_ref,
                        out_ref, xu_ref):
    B, T, D = x_ref.shape

    u = u_ref[...]            # (D, H), resident
    bh = bh_ref[...]          # (1, H), lane-dense 2-D bias
    x = x_ref[...]            # (B, T, D), fully resident in VMEM/vregs

    # --- Hoisted input projection (OFF the serial dependence chain) -------
    # All T projections are issued before the recurrence starts; nothing here
    # depends on h, so the MXU pushes pipeline back-to-back and the bias add
    # never sits on the recurrent critical path.
    # TODO(synk): once T*B grows, replace this static loop with a single
    # flattened (T*B, D) @ (D, H) matmul streamed via a time-chunked grid
    # (BlockSpec index_map doing the T-major addressing) instead of keeping
    # x / xu fully resident.
    for t in range(T):                           # static trip count
        xu_ref[t] = (
            jnp.dot(x[:, t, :], u, preferred_element_type=jnp.float32) + bh
        )

    # --- Sequential recurrence --------------------------------------------
    w = w_ref[...]                               # hoisted, stays resident

    # Peeled t = 0: h_0 == 0  =>  h_1 = tanh(xu_0); skips the wasted 0 @ W
    # MXU pass that would otherwise sit on the latency-bound serial chain.
    h = jnp.tanh(xu_ref[0])

    def step(t, h_prev):
        # Per-step critical path: one (B, H) x (H, H) MXU matmul (bf16
        # operands if enabled, f32 accumulate) + VALU add + EUP tanh.
        return jnp.tanh(
            xu_ref[t]
            + jnp.dot(h_prev.astype(w.dtype), w,
                      preferred_element_type=jnp.float32)
        )

    if T > 1:
        # Capped unroll: full unroll at large T bloats the instruction stream
        # and vreg live ranges with nothing to overlap (the chain is
        # data-dependent anyway).
        h = lax.fori_loop(1, T, step, h, unroll=min(T - 1, 8))

    # --- Final projection ----------------------------------------------------
    v = v_ref[...]
    out_ref[...] = (
        jnp.dot(h.astype(v.dtype), v, preferred_element_type=jnp.float32)
        + bp_ref[...]
    )


def vanilla_rnn_forward(x, U, W, V, bh, bp, *, use_bf16_matmul=False):
    """x: (batch, seq_len, input_dim). Returns (batch, num_classes) float32."""
    B, T, D = x.shape
    H = U.shape[1]
    C = V.shape[1]

    # Lane-dense 2-D biases (single broadcast add, not per-step 1-D bias).
    bh2 = bh.reshape(1, H).astype(jnp.float32)
    bp2 = bp.reshape(1, C).astype(jnp.float32)

    if use_bf16_matmul:
        # bf16 MXU operands are native on every generation; accumulation and
        # the tanh/add path stay f32 inside the kernel.  Gated off by default
        # so the strict f32 reference tolerance (1e-5) holds.
        x, U, W, V = (a.astype(jnp.bfloat16) for a in (x, U, W, V))
    else:
        x, U, W, V = (a.astype(jnp.float32) for a in (x, U, W, V))

    vmem = pl.BlockSpec(memory_space=pltpu.MemorySpace.VMEM)

    out = pl.pallas_call(
        _vanilla_rnn_kernel,
        out_shape=jax.ShapeDtypeStruct((B, C), jnp.float32),
        in_specs=[vmem] * 6,
        out_specs=vmem,
        scratch_shapes=[pltpu.VMEM((T, B, H), jnp.float32)],
        compiler_params=pltpu.CompilerParams(
            # Everything (x, weights, xu scratch, out) is VMEM-resident;
            # budget it explicitly so the design stays valid on v7x
            # (64 MiB physical VMEM, 32 MiB scoped default).
            vmem_limit_bytes=32 * 1024 * 1024,
        ),
    )(x, U, W, V, bh2, bp2)

    # TODO(synk): for large B on v7x, shard the batch across the two
    # TensorCores with a leading core-parallel grid axis; at B=2/H=32 that is
    # pure overhead, so keep single-core here.
    return out


def _reference_forward(x, U, W, V, bh, bp):
    B, T, D = x.shape
    h = jnp.zeros((B, U.shape[1]), jnp.float32)
    for t in range(T):
        h = jnp.tanh(x[:, t] @ U + h @ W + bh)
    return h @ V + bp


if __name__ == "__main__":
    # Shapes implied by the module: x is (batch, seq_length, input_dim).
    batch_size = 2
    seq_length = 8
    input_dim = 16
    num_hidden = 32
    num_classes = 4

    key = jax.random.PRNGKey(0)
    k_u, k_w, k_v, k_x = jax.random.split(key, 4)

    std = 0.001  # matches nn.init.normal_(..., mean=0.0, std=0.001)
    U = (std * jax.random.normal(k_u, (input_dim, num_hidden))).astype(jnp.float32)
    W = (std * jax.random.normal(k_w, (num_hidden, num_hidden))).astype(jnp.float32)
    V = (std * jax.random.normal(k_v, (num_hidden, num_classes))).astype(jnp.float32)
    bh = jnp.zeros((num_hidden,), jnp.float32)
    bp = jnp.zeros((num_classes,), jnp.float32)

    x = jax.random.normal(k_x, (batch_size, seq_length, input_dim),
                          dtype=jnp.float32)

    out = vanilla_rnn_forward(x, U, W, V, bh, bp)
    out = jax.block_until_ready(out)

    ref = _reference_forward(x, U, W, V, bh, bp)
    assert out.shape == (batch_size, num_classes)
    assert jnp.allclose(out, ref, atol=1e-5, rtol=1e-5)

    print("KERNEL_OK")
</pallas_src>

<mosaic_0001>
module attributes {stable_mosaic.version = 11 : i64} {
  func.func @_vanilla_rnn_kernel(%arg0: memref<2x8x16xf32, #tpu.memory_space<vmem>>, %arg1: memref<16x32xf32, #tpu.memory_space<vmem>>, %arg2: memref<32x32xf32, #tpu.memory_space<vmem>>, %arg3: memref<32x4xf32, #tpu.memory_space<vmem>>, %arg4: memref<1x32xf32, #tpu.memory_space<vmem>>, %arg5: memref<1x4xf32, #tpu.memory_space<vmem>>, %arg6: memref<2x4xf32, #tpu.memory_space<vmem>>, %arg7: memref<8x2x32xf32, #tpu.memory_space<vmem>>) attributes {dimension_semantics = [], scalar_prefetch = 0 : i64, scratch_operands = 1 : i64, tpu.core_type = #tpu.core_type<tc>} {
    %c0 = arith.constant 0 : index
    %c0_0 = arith.constant 0 : index
    %0 = vector.load %arg1[%c0, %c0_0] : memref<16x32xf32, #tpu.memory_space<vmem>>, vector<16x32xf32>
    %c0_1 = arith.constant 0 : index
    %c0_2 = arith.constant 0 : index
    %1 = vector.load %arg4[%c0_1, %c0_2] : memref<1x32xf32, #tpu.memory_space<vmem>>, vector<1x32xf32>
    %c0_3 = arith.constant 0 : index
    %c0_4 = arith.constant 0 : index
    %c0_5 = arith.constant 0 : index
    %2 = vector.load %arg0[%c0_3, %c0_4, %c0_5] : memref<2x8x16xf32, #tpu.memory_space<vmem>>, vector<2x8x16xf32>
    %3 = vector.extract_strided_slice %2 {offsets = [0, 0, 0], sizes = [2, 1, 16], strides = [1, 1, 1]} : vector<2x8x16xf32> to vector<2x1x16xf32>
    %4 = vector.shape_cast %3 : vector<2x1x16xf32> to vector<2x16xf32>
    %cst = arith.constant dense<0.000000e+00> : vector<2x32xf32>
    %5 = tpu.matmul %4, %0, %cst {dimension_numbers = #tpu.dot_dimension_numbers<[1], [0], [0], [1], [0, 0, 1, 1], [], []>} : vector<2x16xf32>, vector<16x32xf32>, vector<2x32xf32> -> vector<2x32xf32>
    %6 = vector.broadcast %1 : vector<1x32xf32> to vector<2x32xf32>
    %7 = arith.addf %5, %6 : vector<2x32xf32>
    %c0_6 = arith.constant 0 : index
    %c0_7 = arith.constant 0 : index
    %c0_8 = arith.constant 0 : index
    %8 = vector.load %arg7[%c0_6, %c0_7, %c0_8] : memref<8x2x32xf32, #tpu.memory_space<vmem>>, vector<1x2x32xf32>
    %9 = vector.shape_cast %8 : vector<1x2x32xf32> to vector<2x32xf32>
    %10 = vector.shape_cast %7 : vector<2x32xf32> to vector<1x2x32xf32>
    tpu.vector_store %arg7[%c0_6, %c0_7, %c0_8], %10 {strides = array<i32>} : memref<8x2x32xf32, #tpu.memory_space<vmem>>, vector<1x2x32xf32>,
    %11 = vector.extract_strided_slice %2 {offsets = [0, 1, 0], sizes = [2, 1, 16], strides = [1, 1, 1]} : vector<2x8x16xf32> to vector<2x1x16xf32>
    %12 = vector.shape_cast %11 : vector<2x1x16xf32> to vector<2x16xf32>
    %cst_9 = arith.constant dense<0.000000e+00> : vector<2x32xf32>
    %13 = tpu.matmul %12, %0, %cst_9 {dimension_numbers = #tpu.dot_dimension_numbers<[1], [0], [0], [1], [0, 0, 1, 1], [], []>} : vector<2x16xf32>, vector<16x32xf32>, vector<2x32xf32> -> vector<2x32xf32>
    %14 = vector.broadcast %1 : vector<1x32xf32> to vector<2x32xf32>
    %15 = arith.addf %13, %14 : vector<2x32xf32>
    %c1 = arith.constant 1 : index
    %c0_10 = arith.constant 0 : index
    %c0_11 = arith.constant 0 : index
    %16 = vector.load %arg7[%c1, %c0_10, %c0_11] : memref<8x2x32xf32, #tpu.memory_space<vmem>>, vector<1x2x32xf32>
    %17 = vector.shape_cast %16 : vector<1x2x32xf32> to vector<2x32xf32>
    %18 = vector.shape_cast %15 : vector<2x32xf32> to vector<1x2x32xf32>
    tpu.vector_store %arg7[%c1, %c0_10, %c0_11], %18 {strides = array<i32>} : memref<8x2x32xf32, #tpu.memory_space<vmem>>, vector<1x2x32xf32>,
    %19 = vector.extract_strided_slice %2 {offsets = [0, 2, 0], sizes = [2, 1, 16], strides = [1, 1, 1]} : vector<2x8x16xf32> to vector<2x1x16xf32>
    %20 = vector.shape_cast %19 : vector<2x1x16xf32> to vector<2x16xf32>
    %cst_12 = arith.constant dense<0.000000e+00> : vector<2x32xf32>
    %21 = tpu.matmul %20, %0, %cst_12 {dimension_numbers = #tpu.dot_dimension_numbers<[1], [0], [0], [1], [0, 0, 1, 1], [], []>} : vector<2x16xf32>, vector<16x32xf32>, vector<2x32xf32> -> vector<2x32xf32>
    %22 = vector.broadcast %1 : vector<1x32xf32> to vector<2x32xf32>
    %23 = arith.addf %21, %22 : vector<2x32xf32>
    %c2 = arith.constant 2 : index
    %c0_13 = arith.constant 0 : index
    %c0_14 = arith.constant 0 : index
    %24 = vector.load %arg7[%c2, %c0_13, %c0_14] : memref<8x2x32xf32, #tpu.memory_space<vmem>>, vector<1x2x32xf32>
    %25 = vector.shape_cast %24 : vector<1x2x32xf32> to vector<2x32xf32>
    %26 = vector.shape_cast %23 : vector<2x32xf32> to vector<1x2x32xf32>
    tpu.vector_store %arg7[%c2, %c0_13, %c0_14], %26 {strides = array<i32>} : memref<8x2x32xf32, #tpu.memory_space<vmem>>, vector<1x2x32xf32>,
    %27 = vector.extract_strided_slice %2 {offsets = [0, 3, 0], sizes = [2, 1, 16], strides = [1, 1, 1]} : vector<2x8x16xf32> to vector<2x1x16xf32>
    %28 = vector.shape_cast %27 : vector<2x1x16xf32> to vector<2x16xf32>
    %cst_15 = arith.constant dense<0.000000e+00> : vector<2x32xf32>
    %29 = tpu.matmul %28, %0, %cst_15 {dimension_numbers = #tpu.dot_dimension_numbers<[1], [0], [0], [1], [0, 0, 1, 1], [], []>} : vector<2x16xf32>, vector<16x32xf32>, vector<2x32xf32> -> vector<2x32xf32>
    %30 = vector.broadcast %1 : vector<1x32xf32> to vector<2x32xf32>
    %31 = arith.addf %29, %30 : vector<2x32xf32>
    %c3 = arith.constant 3 : index
    %c0_16 = arith.constant 0 : index
    %c0_17 = arith.constant 0 : index
    %32 = vector.load %arg7[%c3, %c0_16, %c0_17] : memref<8x2x32xf32, #tpu.memory_space<vmem>>, vector<1x2x32xf32>
    %33 = vector.shape_cast %32 : vector<1x2x32xf32> to vector<2x32xf32>
    %34 = vector.shape_cast %31 : vector<2x32xf32> to vector<1x2x32xf32>
    tpu.vector_store %arg7[%c3, %c0_16, %c0_17], %34 {strides = array<i32>} : memref<8x2x32xf32, #tpu.memory_space<vmem>>, vector<1x2x32xf32>,
    %35 = vector.extract_strided_slice %2 {offsets = [0, 4, 0], sizes = [2, 1, 16], strides = [1, 1, 1]} : vector<2x8x16xf32> to vector<2x1x16xf32>
    %36 = vector.shape_cast %35 : vector<2x1x16xf32> to vector<2x16xf32>
    %cst_18 = arith.constant dense<0.000000e+00> : vector<2x32xf32>
    %37 = tpu.matmul %36, %0, %cst_18 {dimension_numbers = #tpu.dot_dimension_numbers<[1], [0], [0], [1], [0, 0, 1, 1], [], []>} : vector<2x16xf32>, vector<16x32xf32>, vector<2x32xf32> -> vector<2x32xf32>
    %38 = vector.broadcast %1 : vector<1x32xf32> to vector<2x32xf32>
    %39 = arith.addf %37, %38 : vector<2x32xf32>
    %c4 = arith.constant 4 : index
    %c0_19 = arith.constant 0 : index
    %c0_20 = arith.constant 0 : index
    %40 = vector.load %arg7[%c4, %c0_19, %c0_20] : memref<8x2x32xf32, #tpu.memory_space<vmem>>, vector<1x2x32xf32>
    %41 = vector.shape_cast %40 : vector<1x2x32xf32> to vector<2x32xf32>
    %42 = vector.shape_cast %39 : vector<2x32xf32> to vector<1x2x32xf32>
    tpu.vector_store %arg7[%c4, %c0_19, %c0_20], %42 {strides = array<i32>} : memref<8x2x32xf32, #tpu.memory_space<vmem>>, vector<1x2x32xf32>,
    %43 = vector.extract_strided_slice %2 {offsets = [0, 5, 0], sizes = [2, 1, 16], strides = [1, 1, 1]} : vector<2x8x16xf32> to vector<2x1x16xf32>
    %44 = vector.shape_cast %43 : vector<2x1x16xf32> to vector<2x16xf32>
    %cst_21 = arith.constant dense<0.000000e+00> : vector<2x32xf32>
    %45 = tpu.matmul %44, %0, %cst_21 {dimension_numbers = #tpu.dot_dimension_numbers<[1], [0], [0], [1], [0, 0, 1, 1], [], []>} : vector<2x16xf32>, vector<16x32xf32>, vector<2x32xf32> -> vector<2x32xf32>
    %46 = vector.broadcast %1 : vector<1x32xf32> to vector<2x32xf32>
    %47 = arith.addf %45, %46 : vector<2x32xf32>
    %c5 = arith.constant 5 : index
    %c0_22 = arith.constant 0 : index
    %c0_23 = arith.constant 0 : index
    %48 = vector.load %arg7[%c5, %c0_22, %c0_23] : memref<8x2x32xf32, #tpu.memory_space<vmem>>, vector<1x2x32xf32>
    %49 = vector.shape_cast %48 : vector<1x2x32xf32> to vector<2x32xf32>
    %50 = vector.shape_cast %47 : vector<2x32xf32> to vector<1x2x32xf32>
    tpu.vector_store %arg7[%c5, %c0_22, %c0_23], %50 {strides = array<i32>} : memref<8x2x32xf32, #tpu.memory_space<vmem>>, vector<1x2x32xf32>,
    %51 = vector.extract_strided_slice %2 {offsets = [0, 6, 0], sizes = [2, 1, 16], strides = [1, 1, 1]} : vector<2x8x16xf32> to vector<2x1x16xf32>
    %52 = vector.shape_cast %51 : vector<2x1x16xf32> to vector<2x16xf32>
    %cst_24 = arith.constant dense<0.000000e+00> : vector<2x32xf32>
    %53 = tpu.matmul %52, %0, %cst_24 {dimension_numbers = #tpu.dot_dimension_numbers<[1], [0], [0], [1], [0, 0, 1, 1], [], []>} : vector<2x16xf32>, vector<16x32xf32>, vector<2x32xf32> -> vector<2x32xf32>
    %54 = vector.broadcast %1 : vector<1x32xf32> to vector<2x32xf32>
    %55 = arith.addf %53, %54 : vector<2x32xf32>
    %c6 = arith.constant 6 : index
    %c0_25 = arith.constant 0 : index
    %c0_26 = arith.constant 0 : index
    %56 = vector.load %arg7[%c6, %c0_25, %c0_26] : memref<8x2x32xf32, #tpu.memory_space<vmem>>, vector<1x2x32xf32>
    %57 = vector.shape_cast %56 : vector<1x2x32xf32> to vector<2x32xf32>
    %58 = vector.shape_cast %55 : vector<2x32xf32> to vector<1x2x32xf32>
    tpu.vector_store %arg7[%c6, %c0_25, %c0_26], %58 {strides = array<i32>} : memref<8x2x32xf32, #tpu.memory_space<vmem>>, vector<1x2x32xf32>,
    %59 = vector.extract_strided_slice %2 {offsets = [0, 7, 0], sizes = [2, 1, 16], strides = [1, 1, 1]} : vector<2x8x16xf32> to vector<2x1x16xf32>
    %60 = vector.shape_cast %59 : vector<2x1x16xf32> to vector<2x16xf32>
    %cst_27 = arith.constant dense<0.000000e+00> : vector<2x32xf32>
    %61 = tpu.matmul %60, %0, %cst_27 {dimension_numbers = #tpu.dot_dimension_numbers<[1], [0], [0], [1], [0, 0, 1, 1], [], []>} : vector<2x16xf32>, vector<16x32xf32>, vector<2x32xf32> -> vector<2x32xf32>
    %62 = vector.broadcast %1 : vector<1x32xf32> to vector<2x32xf32>
    %63 = arith.addf %61, %62 : vector<2x32xf32>
    %c7 = arith.constant 7 : index
    %c0_28 = arith.constant 0 : index
    %c0_29 = arith.constant 0 : index
    %64 = vector.load %arg7[%c7, %c0_28, %c0_29] : memref<8x2x32xf32, #tpu.memory_space<vmem>>, vector<1x2x32xf32>
    %65 = vector.shape_cast %64 : vector<1x2x32xf32> to vector<2x32xf32>
    %66 = vector.shape_cast %63 : vector<2x32xf32> to vector<1x2x32xf32>
    tpu.vector_store %arg7[%c7, %c0_28, %c0_29], %66 {strides = array<i32>} : memref<8x2x32xf32, #tpu.memory_space<vmem>>, vector<1x2x32xf32>,
    %c0_30 = arith.constant 0 : index
    %c0_31 = arith.constant 0 : index
    %67 = vector.load %arg2[%c0_30, %c0_31] : memref<32x32xf32, #tpu.memory_space<vmem>>, vector<32x32xf32>
    %c0_32 = arith.constant 0 : index
    %c0_33 = arith.constant 0 : index
    %c0_34 = arith.constant 0 : index
    %68 = vector.load %arg7[%c0_32, %c0_33, %c0_34] : memref<8x2x32xf32, #tpu.memory_space<vmem>>, vector<1x2x32xf32>
    %69 = vector.shape_cast %68 : vector<1x2x32xf32> to vector<2x32xf32>
    %70 = math.tanh %69 : vector<2x32xf32>
    %c1_i32 = arith.constant 1 : i32
    %71 = arith.index_cast %c1_i32 : i32 to index
    %c0_35 = arith.constant 0 : index
    %c0_36 = arith.constant 0 : index
    %72 = vector.load %arg7[%71, %c0_35, %c0_36] : memref<8x2x32xf32, #tpu.memory_space<vmem>>, vector<1x2x32xf32>
    %73 = vector.shape_cast %72 : vector<1x2x32xf32> to vector<2x32xf32>
    %cst_37 = arith.constant dense<0.000000e+00> : vector<2x32xf32>
    %74 = tpu.matmul %70, %67, %cst_37 {dimension_numbers = #tpu.dot_dimension_numbers<[1], [0], [0], [1], [0, 0, 1, 1], [], []>} : vector<2x32xf32>, vector<32x32xf32>, vector<2x32xf32> -> vector<2x32xf32>
    %75 = arith.addf %73, %74 : vector<2x32xf32>
    %76 = math.tanh %75 : vector<2x32xf32>
    %c2_i32 = arith.constant 2 : i32
    %77 = arith.index_cast %c2_i32 : i32 to index
    %c0_38 = arith.constant 0 : index
    %c0_39 = arith.constant 0 : index
    %78 = vector.load %arg7[%77, %c0_38, %c0_39] : memref<8x2x32xf32, #tpu.memory_space<vmem>>, vector<1x2x32xf32>
    %79 = vector.shape_cast %78 : vector<1x2x32xf32> to vector<2x32xf32>
    %cst_40 = arith.constant dense<0.000000e+00> : vector<2x32xf32>
    %80 = tpu.matmul %76, %67, %cst_40 {dimension_numbers = #tpu.dot_dimension_numbers<[1], [0], [0], [1], [0, 0, 1, 1], [], []>} : vector<2x32xf32>, vector<32x32xf32>, vector<2x32xf32> -> vector<2x32xf32>
    %81 = arith.addf %79, %80 : vector<2x32xf32>
    %82 = math.tanh %81 : vector<2x32xf32>
    %c3_i32 = arith.constant 3 : i32
    %83 = arith.index_cast %c3_i32 : i32 to index
    %c0_41 = arith.constant 0 : index
    %c0_42 = arith.constant 0 : index
    %84 = vector.load %arg7[%83, %c0_41, %c0_42] : memref<8x2x32xf32, #tpu.memory_space<vmem>>, vector<1x2x32xf32>
    %85 = vector.shape_cast %84 : vector<1x2x32xf32> to vector<2x32xf32>
    %cst_43 = arith.constant dense<0.000000e+00> : vector<2x32xf32>
    %86 = tpu.matmul %82, %67, %cst_43 {dimension_numbers = #tpu.dot_dimension_numbers<[1], [0], [0], [1], [0, 0, 1, 1], [], []>} : vector<2x32xf32>, vector<32x32xf32>, vector<2x32xf32> -> vector<2x32xf32>
    %87 = arith.addf %85, %86 : vector<2x32xf32>
    %88 = math.tanh %87 : vector<2x32xf32>
    %c4_i32 = arith.constant 4 : i32
    %89 = arith.index_cast %c4_i32 : i32 to index
    %c0_44 = arith.constant 0 : index
    %c0_45 = arith.constant 0 : index
    %90 = vector.load %arg7[%89, %c0_44, %c0_45] : memref<8x2x32xf32, #tpu.memory_space<vmem>>, vector<1x2x32xf32>
    %91 = vector.shape_cast %90 : vector<1x2x32xf32> to vector<2x32xf32>
    %cst_46 = arith.constant dense<0.000000e+00> : vector<2x32xf32>
    %92 = tpu.matmul %88, %67, %cst_46 {dimension_numbers = #tpu.dot_dimension_numbers<[1], [0], [0], [1], [0, 0, 1, 1], [], []>} : vector<2x32xf32>, vector<32x32xf32>, vector<2x32xf32> -> vector<2x32xf32>
    %93 = arith.addf %91, %92 : vector<2x32xf32>
    %94 = math.tanh %93 : vector<2x32xf32>
    %c5_i32 = arith.constant 5 : i32
    %95 = arith.index_cast %c5_i32 : i32 to index
    %c0_47 = arith.constant 0 : index
    %c0_48 = arith.constant 0 : index
    %96 = vector.load %arg7[%95, %c0_47, %c0_48] : memref<8x2x32xf32, #tpu.memory_space<vmem>>, vector<1x2x32xf32>
    %97 = vector.shape_cast %96 : vector<1x2x32xf32> to vector<2x32xf32>
    %cst_49 = arith.constant dense<0.000000e+00> : vector<2x32xf32>
    %98 = tpu.matmul %94, %67, %cst_49 {dimension_numbers = #tpu.dot_dimension_numbers<[1], [0], [0], [1], [0, 0, 1, 1], [], []>} : vector<2x32xf32>, vector<32x32xf32>, vector<2x32xf32> -> vector<2x32xf32>
    %99 = arith.addf %97, %98 : vector<2x32xf32>
    %100 = math.tanh %99 : vector<2x32xf32>
    %c6_i32 = arith.constant 6 : i32
    %101 = arith.index_cast %c6_i32 : i32 to index
    %c0_50 = arith.constant 0 : index
    %c0_51 = arith.constant 0 : index
    %102 = vector.load %arg7[%101, %c0_50, %c0_51] : memref<8x2x32xf32, #tpu.memory_space<vmem>>, vector<1x2x32xf32>
    %103 = vector.shape_cast %102 : vector<1x2x32xf32> to vector<2x32xf32>
    %cst_52 = arith.constant dense<0.000000e+00> : vector<2x32xf32>
    %104 = tpu.matmul %100, %67, %cst_52 {dimension_numbers = #tpu.dot_dimension_numbers<[1], [0], [0], [1], [0, 0, 1, 1], [], []>} : vector<2x32xf32>, vector<32x32xf32>, vector<2x32xf32> -> vector<2x32xf32>
    %105 = arith.addf %103, %104 : vector<2x32xf32>
    %106 = math.tanh %105 : vector<2x32xf32>
    %c7_i32 = arith.constant 7 : i32
    %107 = arith.index_cast %c7_i32 : i32 to index
    %c0_53 = arith.constant 0 : index
    %c0_54 = arith.constant 0 : index
    %108 = vector.load %arg7[%107, %c0_53, %c0_54] : memref<8x2x32xf32, #tpu.memory_space<vmem>>, vector<1x2x32xf32>
    %109 = vector.shape_cast %108 : vector<1x2x32xf32> to vector<2x32xf32>
    %cst_55 = arith.constant dense<0.000000e+00> : vector<2x32xf32>
    %110 = tpu.matmul %106, %67, %cst_55 {dimension_numbers = #tpu.dot_dimension_numbers<[1], [0], [0], [1], [0, 0, 1, 1], [], []>} : vector<2x32xf32>, vector<32x32xf32>, vector<2x32xf32> -> vector<2x32xf32>
    %111 = arith.addf %109, %110 : vector<2x32xf32>
    %112 = math.tanh %111 : vector<2x32xf32>
    %c7_i32_56 = arith.constant 7 : i32
    %c0_57 = arith.constant 0 : index
    %c0_58 = arith.constant 0 : index
    %113 = vector.load %arg3[%c0_57, %c0_58] : memref<32x4xf32, #tpu.memory_space<vmem>>, vector<32x4xf32>
    %cst_59 = arith.constant dense<0.000000e+00> : vector<2x4xf32>
    %114 = tpu.matmul %112, %113, %cst_59 {dimension_numbers = #tpu.dot_dimension_numbers<[1], [0], [0], [1], [0, 0, 1, 1], [], []>} : vector<2x32xf32>, vector<32x4xf32>, vector<2x4xf32> -> vector<2x4xf32>
    %c0_60 = arith.constant 0 : index
    %c0_61 = arith.constant 0 : index
    %115 = vector.load %arg5[%c0_60, %c0_61] : memref<1x4xf32, #tpu.memory_space<vmem>>, vector<1x4xf32>
    %116 = vector.broadcast %115 : vector<1x4xf32> to vector<2x4xf32>
    %117 = arith.addf %114, %116 : vector<2x4xf32>
    %c0_62 = arith.constant 0 : index
    %c0_63 = arith.constant 0 : index
    %118 = vector.load %arg6[%c0_62, %c0_63] : memref<2x4xf32, #tpu.memory_space<vmem>>, vector<2x4xf32>
    tpu.vector_store %arg6[%c0_62, %c0_63], %117 {strides = array<i32>} : memref<2x4xf32, #tpu.memory_space<vmem>>, vector<2x4xf32>,
    return
  }
}

</mosaic_0001>

<bundles_post_ra>
// kernel: tpu_custom_call.1
= control target key start
LH: loop header
LB: loop body
LE: loop exit
PB: predicated region body
PF: predicated region fallthrough
CT: control target
= control target key end

     0   :  { %11 = vsyncpa [#allocation4], 0  ;;  %s1971_s0 = inlined_call_operand.hbm [shape: f32[2,8,16], index: 0, kind: input, shape index: {}]   ;;  %s1972_s1 = inlined_call_operand.hbm [shape: f32[16,32], index: 1, kind: input, shape index: {}]   ;;  %s1973_s2 = inlined_call_operand.vmem [shape: f32[32,32], index: 2, kind: input, shape index: {}]   ;;  %s1974_s3 = inlined_call_operand.vmem [shape: f32[32,4], index: 3, kind: input, shape index: {}]   ;;  %s1975_s4 = inlined_call_operand.vmem [shape: f32[1,32], index: 4, kind: input, shape index: {}]   ;;  %s1976_s5 = inlined_call_operand.vmem [shape: f32[1,4], index: 5, kind: input, shape index: {}]   ;;  %s1977_s6 = inlined_call_operand.hbm [shape: f32[2,4], index: 6, kind: output, shape index: {}]  }
   0x1   :  { %12 = vsyncpa [#allocation7], 0 }
   0x2   :  { %13 = vsyncpa [#allocation5], 0  ;;  %s1716_s21 = smov [#allocation3]   ;;  %s1644_s25 = scalar_lea.hbm %s1971_s0, 256 }
   0x3   :  { %s19_s22 = sshll.u32 %s1716_s21, 4  ;;  %p1645_p0 = scmp.ne.s32.totalorder %s1971_s0, %s1644_s25  ;;  %s20_s22 = int_to_ptr.vmem [resolvable:$true] %s19_s22 }
   0x4   :  { %p1648_p1 = scmp.lt.u32.totalorder %s1644_s25, %s1971_s0 }
   0x6   :  { %p1650_p2 = pnand %p1648_p1, %p1645_p0 }
   0x8   :  { %1653 = shalt.err (!%p1650_p2)
}
   0x9   :  { %s1654_s30 = scalar_lea.vmem %s20_s22, 256  ;;  %p1659_p4 = scmp.lt.s32.totalorder %s20_s22, %s20_s22 }
   0xa   :  { %p1655_p3 = scmp.ne.s32.totalorder %s20_s22, %s1654_s30  ;;  %p1660_p5 = scmp.lt.s32.totalorder %s1654_s30, %s1654_s30 }
   0xc   :  { %p1661_p6 = por %p1660_p5, %p1659_p4 }
   0xe   :  { %p1662_p7 = pnand %p1661_p6, %p1655_p3 }
  0x10   :  { %1665 = shalt.err (!%p1662_p7)
}
  0x11   :  { %s1717_s7 = smov 128   ;;  %s1718_s8 = smov 8  }
  0x12   :  { %25 = dma.hbm_to_vmem [thread:$0]  %s1971_s0, 256, %s20_s22, [#allocation4], %s1717_s7, %s1717_s7, %s1718_s8  }
  0x13   :  { %s1719_s11 = smov [#allocation6]   ;;  %s1666_s15 = scalar_lea.hbm %s1972_s1, 256 }
  0x14   :  { %s31_s12 = sshll.u32 %s1719_s11, 4  ;;  %p1667_p8 = scmp.ne.s32.totalorder %s1972_s1, %s1666_s15  ;;  %s32_s12 = int_to_ptr.vmem [resolvable:$true] %s31_s12 }
  0x15   :  { %p1670_p9 = scmp.lt.u32.totalorder %s1666_s15, %s1972_s1 }
  0x17   :  { %p1672_p10 = pnand %p1670_p9, %p1667_p8 }
  0x19   :  { %1675 = shalt.err (!%p1672_p10)
}
  0x1a   :  { %s1676_s20 = scalar_lea.vmem %s32_s12, 256  ;;  %p1681_p12 = scmp.lt.s32.totalorder %s32_s12, %s32_s12 }
  0x1b   :  { %p1677_p11 = scmp.ne.s32.totalorder %s32_s12, %s1676_s20  ;;  %p1682_p13 = scmp.lt.s32.totalorder %s1676_s20, %s1676_s20 }
  0x1d   :  { %p1683_p0 = por %p1682_p13, %p1681_p12 }
  0x1f   :  { %p1684_p1 = pnand %p1683_p0, %p1677_p11 }
  0x21   :  { %1687 = shalt.err (!%p1684_p1)
}
  0x22   :  { %37 = dma.hbm_to_vmem [thread:$0]  %s1972_s1, 256, %s32_s12, [#allocation7], %s1717_s7, %s1717_s7, %s1718_s8  }
  0x23   :  { %1710 = dma.done.wait [#allocation4], 256  }
  0x24   :  { %1711 = vsyncadd [#allocation4], 4294967040 }
  0x25   :  { %1712 = dma.done.wait [#allocation7], 256  }
  0x26   :  { %1713 = vsyncadd [#allocation7], 4294967040  ;;  %v1720_v0 = vmov 0.0|0.0   ;;  %vm1721_vm0 = vmmov 0   ;;  %v1722_v1 = vmov 0.0   ;;  %v52_v2 = vld [vmem:[#allocation6] sm:$0xff] }
  0x27   :  { %1548 = vmatprep.subr.bf16.mxu0 %v1720_v0  ;;  %1408 = vmatprep.mubr.msk.f32.mxu0 %vm1721_vm0, %v1722_v1  ;;  %v53_v3 = vld [vmem:[#allocation6 + $0x8] sm:$0xff]  ;;  %v1791_v5 = vld [vmem:[#allocation3] sm:$0xff]  ;;  %v1793_v6 = vld [vmem:[#allocation3 + $0x8] sm:$0xff]  ;;  %vm66_vm1 = vcmask 1041409   ;;  %vm68_vm2 = vcmask 130048   ;;  %vm141_vm3 = vcmask 254976  }
  0x28   :  { %1551 = vmatprep.subr.bf16.mxu1 %v1720_v0  ;;  %1415 = vmatprep.mubr.msk.f32.mxu1 %vm1721_vm0, %v1722_v1  ;;  %v1789_v4 = vpack.c.bf16 %v53_v3, %v52_v2  ;;  %v65_v7 = vrot.slane %v1793_v6, 7  ;;  %v219_v9 = vrot.slane %v1791_v5, 2  ;;  %v220_v10 = vrot.slane %v1793_v6, 1  ;;  %v681_v19 = vld [vmem:[%s1973_s2] sm:$0xff]  ;;  %v682_v20 = vld [vmem:[%s1973_s2 + $0x8] sm:$0xff]  ;;  %v683_v22 = vld [vmem:[%s1973_s2 + $0x10] sm:$0xff] }
  0x29   :  { %v373_v12 = vrot.slane %v1791_v5, 4  ;;  %v374_v13 = vrot.slane %v1793_v6, 3  ;;  %v143_v14 = vrot.slane %v1791_v5, 1  ;;  %v527_v17 = vrot.slane %v1791_v5, 6  ;;  %v684_v23 = vld [vmem:[%s1973_s2 + $0x18] sm:$0xff]  ;;  %s1723_s15 = smov [#allocation8]  }
  0x2a   :  { %1550 = vmatpush3.bf16.msra.mxu0 %v1789_v4  ;;  %1553 = vmatpush3.bf16.msra.mxu1 %v1789_v4  ;;  %v67_v8 = vsel %vm66_vm1, %v65_v7, %v1791_v5  ;;  %v221_v11 = vsel %vm66_vm1, %v220_v10, %v219_v9  ;;  %v528_v18 = vrot.slane %v1793_v6, 5  ;;  %v1835_v21 = vpack.c.bf16 %v682_v20, %v681_v19  ;;  %v1868_v29 = vld [vmem:[%s1975_s4] ss:$0 sm:$0xff]  ;;  %s1312_s16 = sshll.u32 %s1723_s15, 4  ;;  %s1313_s16 = int_to_ptr.vmem [resolvable:$true] %s1312_s16 }
  0x2b   :  { %1554 = vmatprep.subr.bf16.mxu0 %v1720_v0  ;;  %1557 = vmatprep.subr.bf16.mxu1 %v1720_v0  ;;  %v375_v15 = vsel %vm66_vm1, %v374_v13, %v373_v12  ;;  %v144_v16 = vsel %vm66_vm1, %v1793_v6, %v143_v14  ;;  %v1850_v25 = vpack.c.bf16 %v684_v23, %v683_v22  ;;  %v296_v26 = vrot.slane %v1791_v5, 3  ;;  %p1693_p3 = scmp.lt.s32.totalorder %s1313_s16, %s1313_s16 }
  0x2c   :  { %v529_v24 = vsel %vm66_vm1, %v528_v18, %v527_v17  ;;  %v297_v27 = vrot.slane %v1793_v6, 2  ;;  %vm688_vm4 = vcmask 261120   ;;  %v450_v47 = vrot.slane %v1791_v5, 5 }
  0x2d   :  { %1409 = vmatmul.mubr.msk.f32.vlgmr.msra.gmra.mrb[0].mxu0 %vm68_vm2, %v67_v8  ;;  %1416 = vmatmul.mubr.msk.f32.vlgmr.msra.gmra.mrb[0].mxu1 %vm68_vm2, %v144_v16  ;;  %v451_v48 = vrot.slane %v1793_v6, 4  ;;  %v604_v50 = vrot.slane %v1791_v5, 7  ;;  %v605_v51 = vrot.slane %v1793_v6, 6  ;;  %vm1304_vm5 = vcmask 25600  }
  0x2e   :  { %1556 = vmatpush3.bf16.msra.mxu0 %v1789_v4  ;;  %1422 = vmatprep.mubr.msk.f32.mxu0 %vm1721_vm0, %v1722_v1  ;;  %v298_v28 = vsel %vm66_vm1, %v297_v27, %v296_v26 }
  0x2f   :  { %1560 = vmatprep.subr.bf16.mxu0 %v1720_v0  ;;  %1559 = vmatpush3.bf16.msra.mxu1 %v1789_v4  ;;  %v452_v49 = vsel %vm66_vm1, %v451_v48, %v450_v47  ;;  %v606_v52 = vsel %vm66_vm1, %v605_v51, %v604_v50 }
  0x30   :  { %1429 = vmatprep.mubr.msk.f32.mxu1 %vm1721_vm0, %v1722_v1  ;;  %1563 = vmatprep.subr.bf16.mxu1 %v1720_v0 }
  0x31   :  { %1423 = vmatmul.mubr.msk.f32.vlgmr.msra.gmra.mrb[2].mxu0 %vm68_vm2, %v221_v11 }
  0x32   :  { %1562 = vmatpush3.bf16.msra.mxu0 %v1789_v4  ;;  %1436 = vmatprep.mubr.msk.f32.mxu0 %vm1721_vm0, %v1722_v1 }
  0x33   :  { %1566 = vmatprep.subr.bf16.mxu0 %v1720_v0  ;;  %1430 = vmatmul.mubr.msk.f32.vlgmr.msra.gmra.mrb[2].mxu1 %vm68_vm2, %v298_v28 }
  0x34   :  { %1565 = vmatpush3.bf16.msra.mxu1 %v1789_v4  ;;  %1443 = vmatprep.mubr.msk.f32.mxu1 %vm1721_vm0, %v1722_v1 }
  0x35   :  { %1437 = vmatmul.mubr.msk.f32.vlgmr.msra.gmra.mrb[4].mxu0 %vm68_vm2, %v375_v15  ;;  %1569 = vmatprep.subr.bf16.mxu1 %v1720_v0 }
  0x36   :  { %1568 = vmatpush3.bf16.msra.mxu0 %v1789_v4  ;;  %1450 = vmatprep.mubr.msk.f32.mxu0 %vm1721_vm0, %v1722_v1 }
  0x37   :  { %1572 = vmatprep.subr.bf16.mxu0 %v1720_v0  ;;  %1444 = vmatmul.mubr.msk.f32.vlgmr.msra.gmra.mrb[4].mxu1 %vm68_vm2, %v452_v49 }
  0x38   :  { %1571 = vmatpush3.bf16.msra.mxu1 %v1789_v4  ;;  %1457 = vmatprep.mubr.msk.f32.mxu1 %vm1721_vm0, %v1722_v1 }
  0x39   :  { %1451 = vmatmul.mubr.msk.f32.vlgmr.msra.gmra.mrb[6].mxu0 %vm68_vm2, %v529_v24  ;;  %1578 = vmatprep.subr.bf16.mxu1 %v1720_v0 }
  0x3a   :  { %1574 = vmatpush3.bf16.msra.mxu0 %v1835_v21  ;;  %1468 = vmatprep.mubr.msk.f32.mxu0 %vm1721_vm0, %v1722_v1 }
  0x3b   :  { %1575 = vmatprep.subr.bf16.mxu0 %v1720_v0  ;;  %1458 = vmatmul.mubr.msk.f32.vlgmr.msra.gmra.mrb[6].mxu1 %vm68_vm2, %v606_v52 }
  0x3c   :  { %1580 = vmatpush3.bf16.msra.mxu1 %v1835_v21  ;;  %1479 = vmatprep.mubr.msk.f32.mxu1 %vm1721_vm0, %v1722_v1 }
  0x3d   :  { %1581 = vmatprep.subr.bf16.mxu1 %v1720_v0 }
  0x3e   :  { %1577 = vmatpush3.bf16.msra.mxu0 %v1850_v25 }
  0x3f   :  { %1584 = vmatprep.subr.bf16.mxu0 %v1720_v0 }
  0x40   :  { %1583 = vmatpush3.bf16.msra.mxu1 %v1850_v25 }
  0x41   :  { %1590 = vmatprep.subr.bf16.mxu1 %v1720_v0 }
 0x100   :  { %v137_v30 = vpop.f32.mrb[0].mxu0  ;;  %v213_v40 = vpop.f32.mrb[0].mxu1 }
 0x101   :  { %v138_v31 = vadd.f32 %v1868_v29, %v137_v30  ;;  %v1410_v32 = vpop.f32.mrb[1].mxu0  ;;  %v214_v42 = vadd.f32 %v1868_v29, %v213_v40  ;;  %v1417_v43 = vpop.f32.mrb[1].mxu1  ;;  %v1338_v40 = vld [vmem:[%s1976_s5] ss:$0 sm:$0xff] }
 0x103   :  { %142 = vst.msk [vmem:[#allocation2] sm:$0x3] %vm141_vm3, %v138_v31  ;;  %218 = vst.msk [vmem:[#allocation2 + $0x2] sm:$0x3] %vm141_vm3, %v214_v42  ;;  %v1221_v31 = vld [vmem:[%s1974_s3 + $0x8] sm:$0xff] }
 0x104   :  { %v290_v35 = vpop.f32.mrb[2].mxu0 }
 0x105   :  { %v291_v36 = vadd.f32 %v1868_v29, %v290_v35  ;;  %v1424_v37 = vpop.f32.mrb[3].mxu0 }
 0x106   :  { %v367_v53 = vpop.f32.mrb[2].mxu1 }
 0x107   :  { %295 = vst.msk [vmem:[#allocation2 + $0x4] sm:$0x3] %vm141_vm3, %v291_v36  ;;  %v368_v54 = vadd.f32 %v1868_v29, %v367_v53  ;;  %v1431_v55 = vpop.f32.mrb[3].mxu1 }
 0x108   :  { %v444_v38 = vpop.f32.mrb[4].mxu0 }
 0x109   :  { %v445_v39 = vadd.f32 %v1868_v29, %v444_v38  ;;  %v1438_v41 = vpop.f32.mrb[5].mxu0  ;;  %372 = vst.msk [vmem:[#allocation2 + $0x6] sm:$0x3] %vm141_vm3, %v368_v54 }
 0x10a   :  { %v685_v33 = vld [vmem:[#allocation2] sm:$0x3]  ;;  %v687_v56 = vld [vmem:[#allocation2 + $0x2] sm:$0x3]  ;;  %v521_v61 = vpop.f32.mrb[4].mxu1 }
 0x10b   :  { %1628 = vtanh.f32 %v685_v33  ;;  %449 = vst.msk [vmem:[#allocation2 + $0x8] sm:$0x3] %vm141_vm3, %v445_v39  ;;  %v522_v62 = vadd.f32 %v1868_v29, %v521_v61  ;;  %v1445_v63 = vpop.f32.mrb[5].mxu1  ;;  %v1223_v33 = vld [vmem:[%s1974_s3 + $0x18] sm:$0xff] }
 0x10c   :  { %v598_v44 = vpop.f32.mrb[6].mxu0 }
 0x10d   :  { %v599_v45 = vadd.f32 %v1868_v29, %v598_v44  ;;  %v1452_v46 = vpop.f32.mrb[7].mxu0  ;;  %526 = vst.msk [vmem:[#allocation2 + $0xa] sm:$0x3] %vm141_vm3, %v522_v62 }
 0x10e   :  { %v675_v2 = vpop.f32.mrb[6].mxu1  ;;  %v764_v5 = vld [vmem:[#allocation2 + $0x4] sm:$0x3] }
 0x10f   :  { %603 = vst.msk [vmem:[#allocation2 + $0xc] sm:$0x3] %vm141_vm3, %v599_v45  ;;  %v676_v3 = vadd.f32 %v1868_v29, %v675_v2  ;;  %v1459_v4 = vpop.f32.mrb[7].mxu1 }
 0x110   :  { %v840_v10 = vld [vmem:[#allocation2 + $0x6] sm:$0x3] }
 0x111   :  { %680 = vst.msk [vmem:[#allocation2 + $0xe] sm:$0x3] %vm141_vm3, %v676_v3 }
 0x112   :  { %v916_v15 = vld [vmem:[#allocation2 + $0x8] sm:$0x3] }
 0x114   :  { %v992_v20 = vld [vmem:[#allocation2 + $0xa] sm:$0x3] }
 0x115   :  { %v1629_v34 = vpop.eup %1628 }
 0x116   :  { %1469 = vmatmul.mubr.msk.f32.vlgmr.msra.gmra.mrb[8].mxu0 %vm688_vm4, %v1629_v34  ;;  %v1068_v27 = vld [vmem:[#allocation2 + $0xc] sm:$0x3] }
 0x117   :  { %1586 = vmatpush3.bf16.msra.mxu0 %v1835_v21  ;;  %1490 = vmatprep.mubr.msk.f32.mxu0 %vm1721_vm0, %v1722_v1 }
 0x118   :  { %1587 = vmatprep.subr.bf16.mxu0 %v1720_v0  ;;  %v1144_v35 = vld [vmem:[#allocation2 + $0xe] sm:$0x3] }
 0x11b   :  { %1589 = vmatpush3.bf16.msra.mxu0 %v1850_v25 }
 0x11c   :  { %1596 = vmatprep.subr.bf16.mxu0 %v1720_v0 }
 0x1e9   :  { %v758_v57 = vpop.f32.mrb[8].mxu0 }
 0x1ea   :  { %v762_v58 = vadd.f32 %v758_v57, %v687_v56  ;;  %v1470_v59 = vpop.f32.mrb[9].mxu0 }
 0x1ec   :  { %1630 = vtanh.f32 %v762_v58 }
 0x1f6   :  { %v1631_v60 = vpop.eup %1630 }
 0x1f7   :  { %1480 = vmatmul.mubr.msk.f32.vlgmr.msra.gmra.mrb[8].mxu1 %vm688_vm4, %v1631_v60 }
 0x1f8   :  { %1592 = vmatpush3.bf16.msra.mxu1 %v1835_v21  ;;  %1501 = vmatprep.mubr.msk.f32.mxu1 %vm1721_vm0, %v1722_v1 }
 0x1f9   :  { %1593 = vmatprep.subr.bf16.mxu1 %v1720_v0 }
 0x1fc   :  { %1595 = vmatpush3.bf16.msra.mxu1 %v1850_v25 }
 0x1fd   :  { %1602 = vmatprep.subr.bf16.mxu1 %v1720_v0 }
 0x2ca   :  { %v834_v6 = vpop.f32.mrb[8].mxu1 }
 0x2cb   :  { %v838_v7 = vadd.f32 %v834_v6, %v764_v5  ;;  %v1481_v8 = vpop.f32.mrb[9].mxu1 }
 0x2cd   :  { %1632 = vtanh.f32 %v838_v7 }
 0x2d7   :  { %v1633_v9 = vpop.eup %1632 }
 0x2d8   :  { %1491 = vmatmul.mubr.msk.f32.vlgmr.msra.gmra.mrb[10].mxu0 %vm688_vm4, %v1633_v9 }
 0x2d9   :  { %1598 = vmatpush3.bf16.msra.mxu0 %v1835_v21  ;;  %1512 = vmatprep.mubr.msk.f32.mxu0 %vm1721_vm0, %v1722_v1 }
 0x2da   :  { %1599 = vmatprep.subr.bf16.mxu0 %v1720_v0 }
 0x2dd   :  { %1601 = vmatpush3.bf16.msra.mxu0 %v1850_v25 }
 0x2de   :  { %1608 = vmatprep.subr.bf16.mxu0 %v1720_v0 }
 0x3ab   :  { %v910_v11 = vpop.f32.mrb[10].mxu0 }
 0x3ac   :  { %v914_v12 = vadd.f32 %v910_v11, %v840_v10  ;;  %v1492_v13 = vpop.f32.mrb[11].mxu0 }
 0x3ae   :  { %1634 = vtanh.f32 %v914_v12 }
 0x3b8   :  { %v1635_v14 = vpop.eup %1634 }
 0x3b9   :  { %1502 = vmatmul.mubr.msk.f32.vlgmr.msra.gmra.mrb[10].mxu1 %vm688_vm4, %v1635_v14 }
 0x3ba   :  { %1604 = vmatpush3.bf16.msra.mxu1 %v1835_v21  ;;  %1523 = vmatprep.mubr.msk.f32.mxu1 %vm1721_vm0, %v1722_v1 }
 0x3bb   :  { %1605 = vmatprep.subr.bf16.mxu1 %v1720_v0 }
 0x3be   :  { %1607 = vmatpush3.bf16.msra.mxu1 %v1850_v25 }
 0x3bf   :  { %1614 = vmatprep.subr.bf16.mxu1 %v1720_v0 }
 0x48c   :  { %v986_v16 = vpop.f32.mrb[10].mxu1 }
 0x48d   :  { %v990_v17 = vadd.f32 %v986_v16, %v916_v15  ;;  %v1503_v18 = vpop.f32.mrb[11].mxu1 }
 0x48f   :  { %1636 = vtanh.f32 %v990_v17 }
 0x499   :  { %v1637_v19 = vpop.eup %1636 }
 0x49a   :  { %1513 = vmatmul.mubr.msk.f32.vlgmr.msra.gmra.mrb[12].mxu0 %vm688_vm4, %v1637_v19 }
 0x49b   :  { %1610 = vmatpush3.bf16.msra.mxu0 %v1835_v21  ;;  %1534 = vmatprep.mubr.msk.f32.mxu0 %vm1721_vm0, %v1722_v1 }
 0x49c   :  { %1611 = vmatprep.subr.bf16.mxu0 %v1720_v0 }
 0x49f   :  { %1613 = vmatpush3.bf16.msra.mxu0 %v1850_v25  ;;  %v1220_v25 = vld [vmem:[%s1974_s3] sm:$0xff] }
 0x4a0   :  { %v1615_v32 = vpack.c.bf16 %v1221_v31, %v1220_v25 }
 0x56d   :  { %v1062_v22 = vpop.f32.mrb[12].mxu0 }
 0x56e   :  { %v1066_v23 = vadd.f32 %v1062_v22, %v992_v20  ;;  %v1514_v24 = vpop.f32.mrb[13].mxu0 }
 0x570   :  { %1638 = vtanh.f32 %v1066_v23 }
 0x57a   :  { %v1639_v26 = vpop.eup %1638 }
 0x57b   :  { %1524 = vmatmul.mubr.msk.f32.vlgmr.msra.gmra.mrb[12].mxu1 %vm688_vm4, %v1639_v26 }
 0x57c   :  { %1545 = vmatprep.mubr.msk.f32.mxu1 %vm1721_vm0, %v1722_v1  ;;  %v1222_v1 = vld [vmem:[%s1974_s3 + $0x10] sm:$0xff]  ;;  %1616 = vmatpush3.bf16.msra.mxu1 %v1615_v32  ;;  %s1688_s3 = scalar_lea.vmem %s1313_s16, 32 }
 0x57d   :  { %v1618_v34 = vpack.c.bf16 %v1223_v33, %v1222_v1  ;;  %1617 = vmatprep.subr.bf16.mxu1 %v1720_v0  ;;  %p1689_p2 = scmp.ne.s32.totalorder %s1313_s16, %s1688_s3  ;;  %p1694_p4 = scmp.lt.s32.totalorder %s1688_s3, %s1688_s3 }
 0x57f   :  { %p1695_p5 = por %p1694_p4, %p1693_p3 }
 0x580   :  { %1619 = vmatpush3.bf16.msra.mxu1 %v1618_v34 }
 0x581   :  { %p1696_p6 = pnand %p1695_p5, %p1689_p2 }
 0x64e   :  { %v1138_v21 = vpop.f32.mrb[12].mxu1 }
 0x64f   :  { %v1142_v28 = vadd.f32 %v1138_v21, %v1068_v27  ;;  %v1525_v29 = vpop.f32.mrb[13].mxu1 }
 0x651   :  { %1640 = vtanh.f32 %v1142_v28 }
 0x65b   :  { %v1641_v30 = vpop.eup %1640 }
 0x65c   :  { %1535 = vmatmul.mubr.msk.f32.vlgmr.msra.gmra.mrb[14].mxu0 %vm688_vm4, %v1641_v30 }
 0x72f   :  { %v1214_v36 = vpop.f32.mrb[14].mxu0 }
 0x730   :  { %v1218_v37 = vadd.f32 %v1214_v36, %v1144_v35  ;;  %v1536_v38 = vpop.f32.mrb[15].mxu0 }
 0x732   :  { %1642 = vtanh.f32 %v1218_v37 }
 0x73c   :  { %v1643_v39 = vpop.eup %1642 }
 0x73d   :  { %1546 = vmatmul.mubr.msk.f32.vlgmr.msra.gmra.mrb[14].mxu1 %vm688_vm4, %v1643_v39 }
 0x810   :  { %v1300_v41 = vpop.f32.mrb[14].mxu1 }
 0x811   :  { %v1301_v42 = vadd.f32 %v1338_v40, %v1300_v41  ;;  %v1547_v43 = vpop.f32.mrb[15].mxu1 }
 0x813   :  { %1305 = vst.msk [vmem:[#allocation8] sm:$0x3] %vm1304_vm5, %v1301_v42 }
 0x814   :  { %1699 = shalt.err (!%p1696_p6)
}
 0x815   :  { %s1700_s19 = scalar_lea.hbm %s1977_s6, 32 }
 0x816   :  { %p1701_p7 = scmp.ne.s32.totalorder %s1977_s6, %s1700_s19  ;;  %p1704_p8 = scmp.lt.u32.totalorder %s1700_s19, %s1977_s6 }
 0x818   :  { %p1706_p9 = pnand %p1704_p8, %p1701_p7 }
 0x81a   :  { %1709 = shalt.err (!%p1706_p9)
}
 0x81b   :  { %1315 = dma.vmem_to_hbm [thread:$0]  %s1313_s16, 32, %s1977_s6, [#allocation5]  }
 0x81c   :  { %1714 = dma.done.wait [#allocation5], 32  }
 0x81d   :  { %1715 = vsyncadd [#allocation5], 4294967264 }
 0x81e   :  { %1319 = vsyncpa [#allocation4], 1 }
 0x81f   :  { %1320 = vsyncpa [#allocation7], 1 }
 0x820   :  { %1321 = vsyncpa [#allocation5], 1 }

</bundles_post_ra>
